<compile_context>
chip_gen: v5e
topology: v5e:2x2
jax: 0.10.0
libtpu: 0.0.40
codegen_flags: <defaults>
</compile_context>

<pallas_src>
import jax
import jax.numpy as jnp
from jax.experimental import pallas as pl
from jax.experimental.pallas import tpu as pltpu

C_IN, C_OUT, KS = 3, 16, 3


def cnn_forward(x, params):
    N, C, H, W = x.shape
    assert C == C_IN and H % 2 == 0 and W % 2 == 0
    H2, W2 = H // 2, W // 2
    HP, WP = H + 2, W + 2            # zero-padded spatial extent (padding=1)
    LC = H * WP                      # conv-accumulator lane length (row stride = WP)
    LSEL = LC - WP - 1               # common length of the 4 maxpool phase views
    LXF = ((HP * WP + (KS - 1) + 127) // 128) * 128   # flat-input lane length

    conv_w = params["conv_w"]        # (C_OUT, C_IN, 3, 3)
    conv_b = params["conv_b"]        # (C_OUT,)
    fc_w = params["fc_w"]            # (2, C_OUT*H2*W2)
    fc_b = params["fc_b"]            # (2,)

    # ---- wrapper-side layout glue (plumbing only, no compute hoisted) ----
    # padding=1, flatten spatial onto the lane axis, pad the tail so the last
    # tap's contiguous slice [base, base+LC) stays in bounds.
    x_pad = jnp.pad(x, ((0, 0), (0, 0), (1, 1), (1, 1)))
    x_flat = x_pad.reshape(N, C_IN, HP * WP)
    x_flat = jnp.pad(x_flat, ((0, 0), (0, 0), (0, LXF - HP * WP)))

    # conv weights regrouped per tap: w9[kh*3 + kw] == conv_w[:, :, kh, kw]
    w9 = jnp.transpose(conv_w, (2, 3, 0, 1)).reshape(KS * KS, C_OUT, C_IN)
    cb = conv_b.reshape(C_OUT, 1)

    # Fold the maxpool's stride-2 selection into the FC weights: the pooled
    # value of (c, h2, w2) sits at lane 2*h2*WP + 2*w2 of the in-kernel "m".
    lanes = (2 * WP * jnp.arange(H2)[:, None]
             + 2 * jnp.arange(W2)[None, :]).reshape(-1)            # (H2*W2,)
    g = jnp.zeros((2, C_OUT, LSEL), jnp.float32)
    g = g.at[:, :, lanes].set(fc_w.reshape(2, C_OUT, H2 * W2))
    fcb = jnp.zeros((1, 128), jnp.float32).at[0, :2].set(fc_b)

    def fused_kernel(x_ref, w9_ref, cb_ref, g_ref, fcb_ref, o_ref):
        # x_ref:(C_IN,LXF) w9_ref:(9,C_OUT,C_IN) cb_ref:(C_OUT,1)
        # g_ref:(2,C_OUT,LSEL) fcb_ref:(1,128) o_ref:(1,128)
        acc = jnp.zeros((C_OUT, LC), jnp.float32)
        for kh in range(KS):                       # 9 MXU taps, f32 accumulation
            for kw in range(KS):
                base = kh * WP + kw
                acc = acc + jnp.dot(w9_ref[kh * KS + kw],
                                    x_ref[:, base:base + LC],
                                    preferred_element_type=jnp.float32)
        relu = jnp.maximum(acc + cb_ref[...], 0.0)                 # (C_OUT, LC)

        # MaxPool2d(2,2): max over the 4 lane-shifted phases. Lanes that fall
        # in the width padding are junk but get zero FC weight in g.
        m = jnp.maximum(
            jnp.maximum(relu[:, 0:LSEL], relu[:, 1:1 + LSEL]),
            jnp.maximum(relu[:, WP:WP + LSEL], relu[:, WP + 1:WP + 1 + LSEL]))

        # Flatten + Linear(C_OUT*H2*W2 -> 2): pool-scattered weights => two
        # full reductions; write a lane-dense (1,128) row (sliced outside).
        s0 = jnp.sum(jnp.sum(m * g_ref[0], axis=1, keepdims=True),
                     axis=0, keepdims=True)                        # (1, 1)
        s1 = jnp.sum(jnp.sum(m * g_ref[1], axis=1, keepdims=True),
                     axis=0, keepdims=True)
        col = jax.lax.broadcasted_iota(jnp.int32, (1, 128), 1)
        o_ref[...] = (jnp.where(col == 0, s0, 0.0)
                      + jnp.where(col == 1, s1, 0.0) + fcb_ref[...])

    out_pad = pl.pallas_call(
        fused_kernel,
        out_shape=jax.ShapeDtypeStruct((N, 1, 128), jnp.float32),
        grid=(N,),
        in_specs=[
            pl.BlockSpec((None, C_IN, LXF), lambda n: (n, 0, 0)),
            pl.BlockSpec((KS * KS, C_OUT, C_IN), lambda n: (0, 0, 0)),
            pl.BlockSpec((C_OUT, 1), lambda n: (0, 0)),
            pl.BlockSpec((2, C_OUT, LSEL), lambda n: (0, 0, 0)),
            pl.BlockSpec((1, 128), lambda n: (0, 0)),
        ],
        out_specs=pl.BlockSpec((None, 1, 128), lambda n: (n, 0, 0)),
        compiler_params=pltpu.CompilerParams(
            dimension_semantics=("parallel",)),    # megacore-shard batch on v7x
    )(x_flat, w9, cb, g, fcb)
    return out_pad[:, 0, :2]


if __name__ == "__main__":
    N, H, W = 2, 16, 16
    D = C_OUT * (H // 2) * (W // 2)   # 1024 (scaled-down analogue of 16*256*256)

    key = jax.random.PRNGKey(0)
    k1, k2, k3, k4, k5 = jax.random.split(key, 5)
    params = {
        "conv_w": jax.random.normal(k1, (C_OUT, C_IN, KS, KS), jnp.float32) * 0.1,
        "conv_b": jax.random.normal(k2, (C_OUT,), jnp.float32) * 0.1,
        "fc_w": jax.random.normal(k3, (2, D), jnp.float32) * 0.02,
        "fc_b": jax.random.normal(k4, (2,), jnp.float32) * 0.02,
    }
    x = jax.random.normal(k5, (N, C_IN, H, W), jnp.float32)

    out = jax.block_until_ready(jax.jit(cnn_forward)(x, params))

    # Pure-JAX reference (same semantics as the PyTorch forward).
    ref = jax.lax.conv_general_dilated(
        x, params["conv_w"], (1, 1), "SAME",
        dimension_numbers=("NCHW", "OIHW", "NCHW"))
    ref = jnp.maximum(ref + params["conv_b"][None, :, None, None], 0.0)
    ref = jax.lax.reduce_window(ref, -jnp.inf, jax.lax.max,
                                (1, 1, 2, 2), (1, 1, 2, 2), "VALID")
    ref = ref.reshape(N, -1) @ params["fc_w"].T + params["fc_b"]
    assert out.shape == (N, 2)
    assert jnp.allclose(out, ref, atol=1e-3, rtol=1e-3)

    print("KERNEL_OK")
</pallas_src>

<mosaic_0001>
module attributes {stable_mosaic.version = 11 : i64} {
  func.func @fused_kernel(%arg0: i32, %arg1: memref<1x3x384xf32, #tpu.memory_space<vmem>>, %arg2: memref<9x16x3xf32, #tpu.memory_space<vmem>>, %arg3: memref<16x1xf32, #tpu.memory_space<vmem>>, %arg4: memref<2x16x269xf32, #tpu.memory_space<vmem>>, %arg5: memref<1x128xf32, #tpu.memory_space<vmem>>, %arg6: memref<1x1x128xf32, #tpu.memory_space<vmem>>) attributes {dimension_semantics = [#tpu.dimension_semantics<parallel>], iteration_bounds = array<i64: 2>, scalar_prefetch = 0 : i64, scratch_operands = 0 : i64, tpu.core_type = #tpu.core_type<tc>, window_params = [{transform_indices = @transform_0, window_bounds = array<i64: 1, 3, 384>}, {pipeline_mode = #tpu.pipeline_mode<synchronous>, transform_indices = @transform_1, window_bounds = array<i64: 9, 16, 3>}, {pipeline_mode = #tpu.pipeline_mode<synchronous>, transform_indices = @transform_2, window_bounds = array<i64: 16, 1>}, {pipeline_mode = #tpu.pipeline_mode<synchronous>, transform_indices = @transform_3, window_bounds = array<i64: 2, 16, 269>}, {pipeline_mode = #tpu.pipeline_mode<synchronous>, transform_indices = @transform_4, window_bounds = array<i64: 1, 128>}, {transform_indices = @transform_5, window_bounds = array<i64: 1, 1, 128>}]} {
    %cst = arith.constant 0.000000e+00 : f32
    %0 = vector.broadcast %cst : f32 to vector<16x288xf32>
    %c0 = arith.constant 0 : index
    %c0_0 = arith.constant 0 : index
    %c0_1 = arith.constant 0 : index
    %1 = vector.load %arg2[%c0, %c0_0, %c0_1] : memref<9x16x3xf32, #tpu.memory_space<vmem>>, vector<1x16x3xf32>
    %2 = vector.shape_cast %1 : vector<1x16x3xf32> to vector<16x3xf32>
    %c0_2 = arith.constant 0 : index
    %c0_3 = arith.constant 0 : index
    %c0_4 = arith.constant 0 : index
    %3 = vector.load %arg1[%c0_2, %c0_3, %c0_4] : memref<1x3x384xf32, #tpu.memory_space<vmem>>, vector<1x3x288xf32>
    %4 = vector.shape_cast %3 : vector<1x3x288xf32> to vector<3x288xf32>
    %cst_5 = arith.constant dense<0.000000e+00> : vector<16x288xf32>
    %5 = tpu.matmul %2, %4, %cst_5 {dimension_numbers = #tpu.dot_dimension_numbers<[1], [0], [0], [1], [0, 0, 1, 1], [], []>} : vector<16x3xf32>, vector<3x288xf32>, vector<16x288xf32> -> vector<16x288xf32>
    %6 = arith.addf %0, %5 : vector<16x288xf32>
    %c1 = arith.constant 1 : index
    %c0_6 = arith.constant 0 : index
    %c0_7 = arith.constant 0 : index
    %7 = vector.load %arg2[%c1, %c0_6, %c0_7] : memref<9x16x3xf32, #tpu.memory_space<vmem>>, vector<1x16x3xf32>
    %8 = vector.shape_cast %7 : vector<1x16x3xf32> to vector<16x3xf32>
    %c0_8 = arith.constant 0 : index
    %c0_9 = arith.constant 0 : index
    %c1_10 = arith.constant 1 : index
    %9 = vector.load %arg1[%c0_8, %c0_9, %c1_10] : memref<1x3x384xf32, #tpu.memory_space<vmem>>, vector<1x3x288xf32>
    %10 = vector.shape_cast %9 : vector<1x3x288xf32> to vector<3x288xf32>
    %cst_11 = arith.constant dense<0.000000e+00> : vector<16x288xf32>
    %11 = tpu.matmul %8, %10, %cst_11 {dimension_numbers = #tpu.dot_dimension_numbers<[1], [0], [0], [1], [0, 0, 1, 1], [], []>} : vector<16x3xf32>, vector<3x288xf32>, vector<16x288xf32> -> vector<16x288xf32>
    %12 = arith.addf %6, %11 : vector<16x288xf32>
    %c2 = arith.constant 2 : index
    %c0_12 = arith.constant 0 : index
    %c0_13 = arith.constant 0 : index
    %13 = vector.load %arg2[%c2, %c0_12, %c0_13] : memref<9x16x3xf32, #tpu.memory_space<vmem>>, vector<1x16x3xf32>
    %14 = vector.shape_cast %13 : vector<1x16x3xf32> to vector<16x3xf32>
    %c0_14 = arith.constant 0 : index
    %c0_15 = arith.constant 0 : index
    %c2_16 = arith.constant 2 : index
    %15 = vector.load %arg1[%c0_14, %c0_15, %c2_16] : memref<1x3x384xf32, #tpu.memory_space<vmem>>, vector<1x3x288xf32>
    %16 = vector.shape_cast %15 : vector<1x3x288xf32> to vector<3x288xf32>
    %cst_17 = arith.constant dense<0.000000e+00> : vector<16x288xf32>
    %17 = tpu.matmul %14, %16, %cst_17 {dimension_numbers = #tpu.dot_dimension_numbers<[1], [0], [0], [1], [0, 0, 1, 1], [], []>} : vector<16x3xf32>, vector<3x288xf32>, vector<16x288xf32> -> vector<16x288xf32>
    %18 = arith.addf %12, %17 : vector<16x288xf32>
    %c3 = arith.constant 3 : index
    %c0_18 = arith.constant 0 : index
    %c0_19 = arith.constant 0 : index
    %19 = vector.load %arg2[%c3, %c0_18, %c0_19] : memref<9x16x3xf32, #tpu.memory_space<vmem>>, vector<1x16x3xf32>
    %20 = vector.shape_cast %19 : vector<1x16x3xf32> to vector<16x3xf32>
    %c0_20 = arith.constant 0 : index
    %c0_21 = arith.constant 0 : index
    %c18 = arith.constant 18 : index
    %21 = vector.load %arg1[%c0_20, %c0_21, %c18] : memref<1x3x384xf32, #tpu.memory_space<vmem>>, vector<1x3x288xf32>
    %22 = vector.shape_cast %21 : vector<1x3x288xf32> to vector<3x288xf32>
    %cst_22 = arith.constant dense<0.000000e+00> : vector<16x288xf32>
    %23 = tpu.matmul %20, %22, %cst_22 {dimension_numbers = #tpu.dot_dimension_numbers<[1], [0], [0], [1], [0, 0, 1, 1], [], []>} : vector<16x3xf32>, vector<3x288xf32>, vector<16x288xf32> -> vector<16x288xf32>
    %24 = arith.addf %18, %23 : vector<16x288xf32>
    %c4 = arith.constant 4 : index
    %c0_23 = arith.constant 0 : index
    %c0_24 = arith.constant 0 : index
    %25 = vector.load %arg2[%c4, %c0_23, %c0_24] : memref<9x16x3xf32, #tpu.memory_space<vmem>>, vector<1x16x3xf32>
    %26 = vector.shape_cast %25 : vector<1x16x3xf32> to vector<16x3xf32>
    %c0_25 = arith.constant 0 : index
    %c0_26 = arith.constant 0 : index
    %c19 = arith.constant 19 : index
    %27 = vector.load %arg1[%c0_25, %c0_26, %c19] : memref<1x3x384xf32, #tpu.memory_space<vmem>>, vector<1x3x288xf32>
    %28 = vector.shape_cast %27 : vector<1x3x288xf32> to vector<3x288xf32>
    %cst_27 = arith.constant dense<0.000000e+00> : vector<16x288xf32>
    %29 = tpu.matmul %26, %28, %cst_27 {dimension_numbers = #tpu.dot_dimension_numbers<[1], [0], [0], [1], [0, 0, 1, 1], [], []>} : vector<16x3xf32>, vector<3x288xf32>, vector<16x288xf32> -> vector<16x288xf32>
    %30 = arith.addf %24, %29 : vector<16x288xf32>
    %c5 = arith.constant 5 : index
    %c0_28 = arith.constant 0 : index
    %c0_29 = arith.constant 0 : index
    %31 = vector.load %arg2[%c5, %c0_28, %c0_29] : memref<9x16x3xf32, #tpu.memory_space<vmem>>, vector<1x16x3xf32>
    %32 = vector.shape_cast %31 : vector<1x16x3xf32> to vector<16x3xf32>
    %c0_30 = arith.constant 0 : index
    %c0_31 = arith.constant 0 : index
    %c20 = arith.constant 20 : index
    %33 = vector.load %arg1[%c0_30, %c0_31, %c20] : memref<1x3x384xf32, #tpu.memory_space<vmem>>, vector<1x3x288xf32>
    %34 = vector.shape_cast %33 : vector<1x3x288xf32> to vector<3x288xf32>
    %cst_32 = arith.constant dense<0.000000e+00> : vector<16x288xf32>
    %35 = tpu.matmul %32, %34, %cst_32 {dimension_numbers = #tpu.dot_dimension_numbers<[1], [0], [0], [1], [0, 0, 1, 1], [], []>} : vector<16x3xf32>, vector<3x288xf32>, vector<16x288xf32> -> vector<16x288xf32>
    %36 = arith.addf %30, %35 : vector<16x288xf32>
    %c6 = arith.constant 6 : index
    %c0_33 = arith.constant 0 : index
    %c0_34 = arith.constant 0 : index
    %37 = vector.load %arg2[%c6, %c0_33, %c0_34] : memref<9x16x3xf32, #tpu.memory_space<vmem>>, vector<1x16x3xf32>
    %38 = vector.shape_cast %37 : vector<1x16x3xf32> to vector<16x3xf32>
    %c0_35 = arith.constant 0 : index
    %c0_36 = arith.constant 0 : index
    %c36 = arith.constant 36 : index
    %39 = vector.load %arg1[%c0_35, %c0_36, %c36] : memref<1x3x384xf32, #tpu.memory_space<vmem>>, vector<1x3x288xf32>
    %40 = vector.shape_cast %39 : vector<1x3x288xf32> to vector<3x288xf32>
    %cst_37 = arith.constant dense<0.000000e+00> : vector<16x288xf32>
    %41 = tpu.matmul %38, %40, %cst_37 {dimension_numbers = #tpu.dot_dimension_numbers<[1], [0], [0], [1], [0, 0, 1, 1], [], []>} : vector<16x3xf32>, vector<3x288xf32>, vector<16x288xf32> -> vector<16x288xf32>
    %42 = arith.addf %36, %41 : vector<16x288xf32>
    %c7 = arith.constant 7 : index
    %c0_38 = arith.constant 0 : index
    %c0_39 = arith.constant 0 : index
    %43 = vector.load %arg2[%c7, %c0_38, %c0_39] : memref<9x16x3xf32, #tpu.memory_space<vmem>>, vector<1x16x3xf32>
    %44 = vector.shape_cast %43 : vector<1x16x3xf32> to vector<16x3xf32>
    %c0_40 = arith.constant 0 : index
    %c0_41 = arith.constant 0 : index
    %c37 = arith.constant 37 : index
    %45 = vector.load %arg1[%c0_40, %c0_41, %c37] : memref<1x3x384xf32, #tpu.memory_space<vmem>>, vector<1x3x288xf32>
    %46 = vector.shape_cast %45 : vector<1x3x288xf32> to vector<3x288xf32>
    %cst_42 = arith.constant dense<0.000000e+00> : vector<16x288xf32>
    %47 = tpu.matmul %44, %46, %cst_42 {dimension_numbers = #tpu.dot_dimension_numbers<[1], [0], [0], [1], [0, 0, 1, 1], [], []>} : vector<16x3xf32>, vector<3x288xf32>, vector<16x288xf32> -> vector<16x288xf32>
    %48 = arith.addf %42, %47 : vector<16x288xf32>
    %c8 = arith.constant 8 : index
    %c0_43 = arith.constant 0 : index
    %c0_44 = arith.constant 0 : index
    %49 = vector.load %arg2[%c8, %c0_43, %c0_44] : memref<9x16x3xf32, #tpu.memory_space<vmem>>, vector<1x16x3xf32>
    %50 = vector.shape_cast %49 : vector<1x16x3xf32> to vector<16x3xf32>
    %c0_45 = arith.constant 0 : index
    %c0_46 = arith.constant 0 : index
    %c38 = arith.constant 38 : index
    %51 = vector.load %arg1[%c0_45, %c0_46, %c38] : memref<1x3x384xf32, #tpu.memory_space<vmem>>, vector<1x3x288xf32>
    %52 = vector.shape_cast %51 : vector<1x3x288xf32> to vector<3x288xf32>
    %cst_47 = arith.constant dense<0.000000e+00> : vector<16x288xf32>
    %53 = tpu.matmul %50, %52, %cst_47 {dimension_numbers = #tpu.dot_dimension_numbers<[1], [0], [0], [1], [0, 0, 1, 1], [], []>} : vector<16x3xf32>, vector<3x288xf32>, vector<16x288xf32> -> vector<16x288xf32>
    %54 = arith.addf %48, %53 : vector<16x288xf32>
    %c0_48 = arith.constant 0 : index
    %c0_49 = arith.constant 0 : index
    %55 = vector.load %arg3[%c0_48, %c0_49] : memref<16x1xf32, #tpu.memory_space<vmem>>, vector<16x1xf32>
    %56 = vector.broadcast %55 : vector<16x1xf32> to vector<16x288xf32>
    %57 = arith.addf %54, %56 : vector<16x288xf32>
    %cst_50 = arith.constant 0.000000e+00 : f32
    %58 = vector.broadcast %cst_50 : f32 to vector<16x288xf32>
    %59 = arith.maximumf %57, %58 : vector<16x288xf32>
    %60 = vector.extract_strided_slice %59 {offsets = [0, 0], sizes = [16, 269], strides = [1, 1]} : vector<16x288xf32> to vector<16x269xf32>
    %61 = vector.extract_strided_slice %59 {offsets = [0, 1], sizes = [16, 269], strides = [1, 1]} : vector<16x288xf32> to vector<16x269xf32>
    %62 = arith.maximumf %60, %61 : vector<16x269xf32>
    %63 = vector.extract_strided_slice %59 {offsets = [0, 18], sizes = [16, 269], strides = [1, 1]} : vector<16x288xf32> to vector<16x269xf32>
    %64 = vector.extract_strided_slice %59 {offsets = [0, 19], sizes = [16, 269], strides = [1, 1]} : vector<16x288xf32> to vector<16x269xf32>
    %65 = arith.maximumf %63, %64 : vector<16x269xf32>
    %66 = arith.maximumf %62, %65 : vector<16x269xf32>
    %c0_51 = arith.constant 0 : index
    %c0_52 = arith.constant 0 : index
    %c0_53 = arith.constant 0 : index
    %67 = vector.load %arg4[%c0_51, %c0_52, %c0_53] : memref<2x16x269xf32, #tpu.memory_space<vmem>>, vector<1x16x269xf32>
    %68 = vector.shape_cast %67 : vector<1x16x269xf32> to vector<16x269xf32>
    %69 = arith.mulf %66, %68 : vector<16x269xf32>
    %cst_54 = arith.constant dense<0.000000e+00> : vector<16xf32>
    %70 = vector.multi_reduction <add>, %69, %cst_54 [1] : vector<16x269xf32> to vector<16xf32>
    %71 = vector.shape_cast %70 : vector<16xf32> to vector<16x1xf32>
    %cst_55 = arith.constant dense<0.000000e+00> : vector<1xf32>
    %72 = vector.multi_reduction <add>, %71, %cst_55 [0] : vector<16x1xf32> to vector<1xf32>
    %73 = vector.shape_cast %72 : vector<1xf32> to vector<1x1xf32>
    %c1_56 = arith.constant 1 : index
    %c0_57 = arith.constant 0 : index
    %c0_58 = arith.constant 0 : index
    %74 = vector.load %arg4[%c1_56, %c0_57, %c0_58] : memref<2x16x269xf32, #tpu.memory_space<vmem>>, vector<1x16x269xf32>
    %75 = vector.shape_cast %74 : vector<1x16x269xf32> to vector<16x269xf32>
    %76 = arith.mulf %66, %75 : vector<16x269xf32>
    %cst_59 = arith.constant dense<0.000000e+00> : vector<16xf32>
    %77 = vector.multi_reduction <add>, %76, %cst_59 [1] : vector<16x269xf32> to vector<16xf32>
    %78 = vector.shape_cast %77 : vector<16xf32> to vector<16x1xf32>
    %cst_60 = arith.constant dense<0.000000e+00> : vector<1xf32>
    %79 = vector.multi_reduction <add>, %78, %cst_60 [0] : vector<16x1xf32> to vector<1xf32>
    %80 = vector.shape_cast %79 : vector<1xf32> to vector<1x1xf32>
    %81 = tpu.iota {dimensions = array<i32: 1>} : vector<1x128xi32>
    %c0_i32 = arith.constant 0 : i32
    %82 = vector.broadcast %c0_i32 : i32 to vector<1x128xi32>
    %83 = arith.cmpi eq, %81, %82 : vector<1x128xi32>
    %cst_61 = arith.constant 0.000000e+00 : f32
    %84 = vector.shape_cast %73 : vector<1x1xf32> to vector<1x1xf32>
    %85 = vector.broadcast %84 : vector<1x1xf32> to vector<1x128xf32>
    %86 = vector.broadcast %cst_61 : f32 to vector<1x128xf32>
    %87 = arith.select %83, %85, %86 : vector<1x128xi1>, vector<1x128xf32>
    %c1_i32 = arith.constant 1 : i32
    %88 = vector.broadcast %c1_i32 : i32 to vector<1x128xi32>
    %89 = arith.cmpi eq, %81, %88 : vector<1x128xi32>
    %cst_62 = arith.constant 0.000000e+00 : f32
    %90 = vector.shape_cast %80 : vector<1x1xf32> to vector<1x1xf32>
    %91 = vector.broadcast %90 : vector<1x1xf32> to vector<1x128xf32>
    %92 = vector.broadcast %cst_62 : f32 to vector<1x128xf32>
    %93 = arith.select %89, %91, %92 : vector<1x128xi1>, vector<1x128xf32>
    %94 = arith.addf %87, %93 : vector<1x128xf32>
    %c0_63 = arith.constant 0 : index
    %c0_64 = arith.constant 0 : index
    %95 = vector.load %arg5[%c0_63, %c0_64] : memref<1x128xf32, #tpu.memory_space<vmem>>, vector<1x128xf32>
    %96 = arith.addf %94, %95 : vector<1x128xf32>
    %c0_65 = arith.constant 0 : index
    %c0_66 = arith.constant 0 : index
    %c0_67 = arith.constant 0 : index
    %97 = vector.load %arg6[%c0_65, %c0_66, %c0_67] : memref<1x1x128xf32, #tpu.memory_space<vmem>>, vector<1x1x128xf32>
    %98 = vector.shape_cast %97 : vector<1x1x128xf32> to vector<1x128xf32>
    %99 = vector.shape_cast %96 : vector<1x128xf32> to vector<1x1x128xf32>
    tpu.vector_store %arg6[%c0_65, %c0_66, %c0_67], %99 {strides = array<i32>} : memref<1x1x128xf32, #tpu.memory_space<vmem>>, vector<1x1x128xf32>,
    return
  }
  func.func @transform_0(%arg0: i32) -> (i32, i32, i32) {
    %c0_i32 = arith.constant 0 : i32
    %c0_i32_0 = arith.constant 0 : i32
    %c0_i32_1 = arith.constant 0 : i32
    return %arg0, %c0_i32, %c0_i32_0 : i32, i32, i32
  }
  func.func @transform_1(%arg0: i32) -> (i32, i32, i32) {
    %c0_i32 = arith.constant 0 : i32
    %c0_i32_0 = arith.constant 0 : i32
    %c0_i32_1 = arith.constant 0 : i32
    %c0_i32_2 = arith.constant 0 : i32
    return %c0_i32, %c0_i32_0, %c0_i32_1 : i32, i32, i32
  }
  func.func @transform_2(%arg0: i32) -> (i32, i32) {
    %c0_i32 = arith.constant 0 : i32
    %c0_i32_0 = arith.constant 0 : i32
    %c0_i32_1 = arith.constant 0 : i32
    return %c0_i32, %c0_i32_0 : i32, i32
  }
  func.func @transform_3(%arg0: i32) -> (i32, i32, i32) {
    %c0_i32 = arith.constant 0 : i32
    %c0_i32_0 = arith.constant 0 : i32
    %c0_i32_1 = arith.constant 0 : i32
    %c0_i32_2 = arith.constant 0 : i32
    return %c0_i32, %c0_i32_0, %c0_i32_1 : i32, i32, i32
  }
  func.func @transform_4(%arg0: i32) -> (i32, i32) {
    %c0_i32 = arith.constant 0 : i32
    %c0_i32_0 = arith.constant 0 : i32
    %c0_i32_1 = arith.constant 0 : i32
    return %c0_i32, %c0_i32_0 : i32, i32
  }
  func.func @transform_5(%arg0: i32) -> (i32, i32, i32) {
    %c0_i32 = arith.constant 0 : i32
    %c0_i32_0 = arith.constant 0 : i32
    %c0_i32_1 = arith.constant 0 : i32
    return %arg0, %c0_i32, %c0_i32_0 : i32, i32, i32
  }
}

</mosaic_0001>

<bundles_post_ra>
// kernel: cnn_forward.1
= control target key start
LH: loop header
LB: loop body
LE: loop exit
PB: predicated region body
PF: predicated region fallthrough
CT: control target
= control target key end

     0   :  { %10 = vsyncpa [#allocation3], 0  ;;  %s2009_s0 = inlined_call_operand.vmem [shape: f32[2,3,384], index: 0, kind: input, shape index: {}]   ;;  %s2010_s1 = inlined_call_operand.vmem [shape: f32[9,16,3], index: 1, kind: input, shape index: {}]   ;;  %s2011_s2 = inlined_call_operand.vmem [shape: f32[16,1], index: 2, kind: input, shape index: {}]   ;;  %s2012_s3 = inlined_call_operand.vmem [shape: f32[2,16,269], index: 3, kind: input, shape index: {}]   ;;  %s2013_s4 = inlined_call_operand.vmem [shape: f32[1,128], index: 4, kind: input, shape index: {}]   ;;  %s2014_s5 = inlined_call_operand.hbm [shape: f32[2,1,128], index: 5, kind: output, shape index: {}]  }
   0x1   :  { %12 = vsyncpa [#allocation3 + $0x1], 0  ;;  %s1674_s18 = smov 0   ;;  %s1676_s19 = smov 0  }
   0x2   :  { %s1678_s20 = smov 0   ;;  %s1680_s21 = smov 0  }
   0x3 LB: > { %s1695_s22 = sadd.s32 4294967295, %s1633_s21   ;;  %s1409_s23 = sadd.s32 4294967294, %s1633_s21   ;;  %s1633_s21 = sphi %s1680_s21, %s2020_s21   ;;  %s1629_s20 = sphi %s1678_s20, %s2019_s20   ;;  %s1625_s19 = sphi %s1676_s19, %s2018_s19   ;;  %s1621_s18 = sphi %s1674_s18, %s2017_s18  }
   0x4   : > { %s1699_s24 = sadd.s32 1, %s1633_s21   ;;  %s135_s25 = sadd.s32 1, %s1629_s20 }
   0x5   : > { %s132_s26 = ssub.s32 %s1633_s21, %s1699_s24  ;;  %p145_p0 = scmp.ne.s32.totalorder %s1629_s20, %s1625_s19 }
   0x6   : > { %p133_p1 = scmp.eq.s32.totalorder %s132_s26, 0  ;;  %p146_p2 = scmp.eq.s32.totalorder %s1695_s22, 1 }
   0x7   : > { %p151_p3 = scmp.ne.s32.totalorder %s1625_s19, %s1621_s18  ;;  %p152_p4 = scmp.eq.s32.totalorder %s1409_s23, 1 }
   0x8   : > { %s1710_s27 = scalar_select %p133_p1, %s1629_s20, %s135_s25  }
   0x9   : > { %p1712_p5 = por %p146_p2, %p145_p0  ;;  %p1716_p6 = por %p152_p4, %p151_p3 }
   0xa   : > { %p1412_p7 = scmp.ge.s32.totalorder %s1633_s21, 1  ;;  %p190_p8 = scmp.lt.s32.totalorder %s1633_s21, 3 }
   0xc   : > { %p191_p9 = pnand %p1412_p7, %p190_p8 }
   0xd   : > { %p217_p10 = scmp.lt.s32.totalorder (!%p191_p9), %s1695_s22, 1  ;;  %s1635_s10 = smov (!%p191_p9), 127  }
   0xe   : > { %194 = sbr.rel (%p191_p9) target bundleno = 768 (0x300), region = 40  ;;  %s1636_s11 = smov (!%p191_p9), 126  }
   0xf   : > { %s1637_s12 = smov (!%p191_p9), 110   ;;  %s1638_s13 = smov (!%p191_p9), 109  }
  0x10   : > { %s1639_s14 = smov (!%p191_p9), 108   ;;  %s1640_s15 = smov (!%p191_p9), 92  }
  0x11   : > { %s1641_s16 = smov (!%p191_p9), 91   ;;  %s1642_s17 = smov (!%p191_p9), 90  }
  0x12   : > { %s1591_s26 = scalar_lea.hbm (!%p191_p9), %s2014_s5, 2 }
  0x13   : > { %s218_s30 = scalar_select %p217_p10, %s1695_s22, 1  ;;  %vm253_vm0 = vcmask 1042432   ;;  %vm243_vm1 = vcmask 1039360   ;;  %v1414_v46 = vld [vmem:[%s2010_s1 + $0x10] sm:$0xff]  ;;  %vm246_vm2 = vcmask 23552   ;;  %vm435_vm3 = vcmask 1031168  }
  0x14   : > { %v1415_v50 = vld [vmem:[%s2010_s1 + $0x18] sm:$0xff]  ;;  %v222_v53 = vld [vmem:[%s2010_s1] sm:$0xff]  ;;  %vm544_vm4 = vcmask 900096   ;;  %v223_v58 = vld [vmem:[%s2010_s1 + $0x8] sm:$0xff]  ;;  %vm653_vm5 = vcmask 891904   ;;  %vm762_vm6 = vcmask 883712  }
  0x15   : > { %s1520_s6 = smul.u32 12, %s218_s30  ;;  %v1434_v55 = vld [vmem:[%s2010_s1 + $0x20] sm:$0xff]  ;;  %v1435_v61 = vld [vmem:[%s2010_s1 + $0x28] sm:$0xff]  ;;  %vm871_vm7 = vcmask 752640   ;;  %vm980_vm8 = vcmask 744448   ;;  %vm1089_vm9 = vcmask 736256  }
  0x16   : > { %vm1284_vm10 = vcmask 105472  }
  0x17   : > { %s1727_s9 = scalar_lea.vmem %s2009_s0, %s1520_s6 }
  0x18   : > { %v225_v0 = vld [vmem:[%s1727_s9 + $0x8] sm:$0x7]  ;;  %v224_v1 = vld [vmem:[%s1727_s9] sm:$0x77] }
  0x19   : > { %233 = vst [vmem:[#allocation1 + $0x10] ss:$2 sm:$0xff] %v225_v0  ;;  %v420_v5 = vld [vmem:[%s1727_s9 + $0x8] sm:$0x7]  ;;  %v419_v6 = vld [vmem:[%s1727_s9] sm:$0x77] }
  0x1a   : > { %231 = vst [vmem:[#allocation1] ss:$2 sm:$0xff] %v224_v1  ;;  %v529_v10 = vld [vmem:[%s1727_s9 + $0x8] sm:$0x7]  ;;  %v528_v11 = vld [vmem:[%s1727_s9] sm:$0x77] }
  0x1b   : > { %v638_v15 = vld [vmem:[%s1727_s9 + $0x8] sm:$0x7]  ;;  %v637_v17 = vld [vmem:[%s1727_s9] sm:$0x77] }
  0x1c   : > { %v747_v20 = vld [vmem:[%s1727_s9 + $0x8] sm:$0x7]  ;;  %v746_v22 = vld [vmem:[%s1727_s9] sm:$0x77] }
  0x1d   : > { %v856_v25 = vld [vmem:[%s1727_s9 + $0x8] sm:$0x7]  ;;  %v855_v27 = vld [vmem:[%s1727_s9] sm:$0x77] }
  0x1e   : > { %v965_v30 = vld [vmem:[%s1727_s9 + $0x8] sm:$0x7]  ;;  %v964_v32 = vld [vmem:[%s1727_s9] sm:$0x77] }
  0x1f   : > { %v1074_v35 = vld [vmem:[%s1727_s9 + $0x8] sm:$0x7]  ;;  %v1073_v37 = vld [vmem:[%s1727_s9] sm:$0x77]  ;;  %s1350_s9 = scalar_lea.hbm %s2014_s5, %s1695_s22 }
  0x20   : > { %v236_v2 = vld.sshfl [vmem:[#allocation1 + $0x10] sm:$0xff pattern:$0x75316420] }
  0x21   : > { %241 = vrot.lane.b32.xlu0 %v236_v2, %s1635_s10  ;;  %331 = vst [vmem:[#allocation1 + $0x10] ss:$2 sm:$0xff] %v225_v0  ;;  %v235_v3 = vld.sshfl [vmem:[#allocation1 + $0x8] sm:$0xff pattern:$0x75316420]  ;;  %v1445_v2 = vld [vmem:[%s2010_s1 + $0x30] sm:$0xff] }
  0x22   : > { %239 = vrot.lane.b32.xlu1 %v235_v3, %s1635_s10  ;;  %v234_v4 = vld.sshfl [vmem:[#allocation1] sm:$0xff pattern:$0x75316420] }
  0x23   : > { %329 = vst [vmem:[#allocation1] ss:$2 sm:$0xff] %v224_v1 }
  0x28   : > { %v1735_v7 = vld.sshfl [vmem:[#allocation1 + $0x10] sm:$0xff pattern:$0x75316420] }
  0x29   : > { %237 = vrot.lane.b32.xlu0 %v234_v4, %s1635_s10  ;;  %425 = vst [vmem:[#allocation1 + $0x10] ss:$2 sm:$0xff] %v420_v5 }
  0x2a   : > { %v1738_v8 = vld.sshfl [vmem:[#allocation1] sm:$0xff pattern:$0x75316420]  ;;  %v1740_v9 = vld.sshfl [vmem:[#allocation1 + $0x8] sm:$0xff pattern:$0x75316420] }
  0x2b   : > { %423 = vst [vmem:[#allocation1] ss:$2 sm:$0xff] %v419_v6 }
  0x30   : > { %v428_v12 = vld.sshfl [vmem:[#allocation1 + $0x10] sm:$0xff pattern:$0x75316420] }
  0x31   : > { %534 = vst [vmem:[#allocation1 + $0x10] ss:$2 sm:$0xff] %v529_v10 }
  0x32   : > { %v426_v13 = vld.sshfl [vmem:[#allocation1] sm:$0xff pattern:$0x75316420]  ;;  %v427_v14 = vld.sshfl [vmem:[#allocation1 + $0x8] sm:$0xff pattern:$0x75316420] }
  0x33   : > { %429 = vrot.lane.b32.xlu1 %v426_v13, %s1636_s11  ;;  %431 = vrot.lane.b32.xlu2 %v427_v14, %s1636_s11  ;;  %532 = vst [vmem:[#allocation1] ss:$2 sm:$0xff] %v528_v11 }
  0x38   : > { %v537_v16 = vld.sshfl [vmem:[#allocation1 + $0x10] sm:$0xff pattern:$0x75316420] }
  0x39   : > { %643 = vst [vmem:[#allocation1 + $0x10] ss:$2 sm:$0xff] %v638_v15 }
  0x3a   : > { %v536_v18 = vld.sshfl [vmem:[#allocation1 + $0x8] sm:$0xff pattern:$0x75316420]  ;;  %v535_v19 = vld.sshfl [vmem:[#allocation1] sm:$0xff pattern:$0x75316420] }
  0x3b   : > { %542 = vrot.lane.b32.xlu1 %v537_v16, %s1637_s12  ;;  %540 = vrot.lane.b32.xlu0 %v536_v18, %s1637_s12  ;;  %641 = vst [vmem:[#allocation1] ss:$2 sm:$0xff] %v637_v17  ;;  %v1457_v18 = vld [vmem:[%s2010_s1 + $0x48] sm:$0xff] }
  0x3c   : > { %433 = vrot.lane.b32.xlu2 %v428_v12, %s1636_s11  ;;  %v1456_v12 = vld [vmem:[%s2010_s1 + $0x40] sm:$0xff] }
  0x40   : > { %v646_v21 = vld.sshfl [vmem:[#allocation1 + $0x10] sm:$0xff pattern:$0x75316420] }
  0x41   : > { %752 = vst [vmem:[#allocation1 + $0x10] ss:$2 sm:$0xff] %v747_v20 }
  0x42   : > { %v645_v23 = vld.sshfl [vmem:[#allocation1 + $0x8] sm:$0xff pattern:$0x75316420]  ;;  %v644_v24 = vld.sshfl [vmem:[#allocation1] sm:$0xff pattern:$0x75316420] }
  0x43   : > { %647 = vrot.lane.b32.xlu1 %v644_v24, %s1638_s13  ;;  %651 = vrot.lane.b32.xlu0 %v646_v21, %s1638_s13  ;;  %750 = vst [vmem:[#allocation1] ss:$2 sm:$0xff] %v746_v22  ;;  %v1467_v24 = vld [vmem:[%s2010_s1 + $0x50] sm:$0xff] }
  0x44   : > { %538 = vrot.lane.b32.xlu2 %v535_v19, %s1637_s12 }
  0x48   : > { %v755_v26 = vld.sshfl [vmem:[#allocation1 + $0x10] sm:$0xff pattern:$0x75316420] }
  0x49   : > { %861 = vst [vmem:[#allocation1 + $0x10] ss:$2 sm:$0xff] %v856_v25 }
  0x4a   : > { %v754_v28 = vld.sshfl [vmem:[#allocation1 + $0x8] sm:$0xff pattern:$0x75316420]  ;;  %v753_v29 = vld.sshfl [vmem:[#allocation1] sm:$0xff pattern:$0x75316420] }
  0x4b   : > { %758 = vrot.lane.b32.xlu1 %v754_v28, %s1639_s14  ;;  %756 = vrot.lane.b32.xlu0 %v753_v29, %s1639_s14  ;;  %859 = vst [vmem:[#allocation1] ss:$2 sm:$0xff] %v855_v27 }
  0x4c   : > { %649 = vrot.lane.b32.xlu2 %v645_v23, %s1638_s13 }
  0x50   : > { %v864_v31 = vld.sshfl [vmem:[#allocation1 + $0x10] sm:$0xff pattern:$0x75316420] }
  0x51   : > { %970 = vst [vmem:[#allocation1 + $0x10] ss:$2 sm:$0xff] %v965_v30 }
  0x52   : > { %v863_v33 = vld.sshfl [vmem:[#allocation1 + $0x8] sm:$0xff pattern:$0x75316420]  ;;  %v862_v34 = vld.sshfl [vmem:[#allocation1] sm:$0xff pattern:$0x75316420] }
  0x53   : > { %760 = vrot.lane.b32.xlu1 %v755_v26, %s1639_s14  ;;  %867 = vrot.lane.b32.xlu0 %v863_v33, %s1640_s15  ;;  %968 = vst [vmem:[#allocation1] ss:$2 sm:$0xff] %v964_v32  ;;  %v1478_v26 = vld [vmem:[%s2010_s1 + $0x60] sm:$0xff]  ;;  %v1479_v32 = vld [vmem:[%s2010_s1 + $0x68] sm:$0xff] }
  0x54   : > { %865 = vrot.lane.b32.xlu2 %v862_v34, %s1640_s15  ;;  %v1179_v33 = vld [vmem:[%s2011_s2] sm:$0xff]  ;;  %v1180_v34 = vld [vmem:[%s2011_s2 + $0x8] sm:$0xff] }
  0x58   : > { %v973_v36 = vld.sshfl [vmem:[#allocation1 + $0x10] sm:$0xff pattern:$0x75316420] }
  0x59   : > { %1079 = vst [vmem:[#allocation1 + $0x10] ss:$2 sm:$0xff] %v1074_v35  ;;  %v1643_v35 = vmov 0  }
  0x5a   : > { %v972_v38 = vld.sshfl [vmem:[#allocation1 + $0x8] sm:$0xff pattern:$0x75316420]  ;;  %v971_v39 = vld.sshfl [vmem:[#allocation1] sm:$0xff pattern:$0x75316420]  ;;  %1569 = vset.pattern.permute.xlu0 %v1643_v35  ;;  %1570 = vset.pattern.permute.xlu1 %v1643_v35 }
  0x5b   : > { %978 = vrot.lane.b32.xlu1 %v973_v36, %s1641_s16  ;;  %976 = vrot.lane.b32.xlu0 %v972_v38, %s1641_s16  ;;  %1077 = vst [vmem:[#allocation1] ss:$2 sm:$0xff] %v1073_v37  ;;  %v1489_v36 = vld [vmem:[%s2010_s1 + $0x70] sm:$0xff]  ;;  %v1490_v37 = vld [vmem:[%s2010_s1 + $0x78] sm:$0xff] }
  0x5c   : > { %869 = vrot.lane.b32.xlu2 %v864_v31, %s1640_s15  ;;  %v1468_v31 = vld [vmem:[%s2010_s1 + $0x58] sm:$0xff]  ;;  %v1500_v38 = vld [vmem:[%s2010_s1 + $0x80] sm:$0xff] }
  0x60   : > { %v1082_v40 = vld.sshfl [vmem:[#allocation1 + $0x10] sm:$0xff pattern:$0x75316420] }
  0x62   : > { %v1080_v41 = vld.sshfl [vmem:[#allocation1] sm:$0xff pattern:$0x75316420]  ;;  %v1081_v42 = vld.sshfl [vmem:[#allocation1 + $0x8] sm:$0xff pattern:$0x75316420] }
  0x63   : > { %1087 = vrot.lane.b32.xlu0 %v1082_v40, %s1642_s17  ;;  %1083 = vrot.lane.b32.xlu1 %v1080_v41, %s1642_s17 }
  0x64   : > { %974 = vrot.lane.b32.xlu2 %v971_v39, %s1641_s16  ;;  %v1501_v39 = vld [vmem:[%s2010_s1 + $0x88] sm:$0xff] }
  0x6b   : > { %1183 = vperm.xlu0 %1569, %v1179_v33   ;;  %1188 = vperm.xlu1 %1570, %v1180_v34  }
  0x6c   : > { %1085 = vrot.lane.b32.xlu2 %v1081_v42, %s1642_s17 }
  0x8d   : > { %v432_v43 = vpop.permute.xlu2 %431 }
  0x93   : > { %v242_v44 = vpop.permute.xlu0 %241 }
  0x94   : > { %v240_v45 = vpop.permute.xlu1 %239  ;;  %1422 = vmatpush.msk.msra.mxu2 %vm253_vm0, %v242_v44 }
  0x95   : > { %v245_v47 = vsel %vm243_vm1, %v240_v45, %v242_v44  ;;  %1423 = vmatmul.msk.f32.vlgmr.msra.gmra.mxu2 %vm246_vm2, %v1414_v46 }
  0x96   : > { %1419 = vmatpush.msk.msra.mxu1 %vm253_vm0, %v245_v47  ;;  %v434_v48 = vpop.permute.xlu2 %433 }
  0x97   : > { %1420 = vmatmul.msk.f32.vlgmr.msra.gmra.mxu1 %vm246_vm2, %v1414_v46  ;;  %v437_v52 = vsel %vm435_vm3, %v432_v43, %v434_v48 }
  0x98   : > { %1431 = vmatpush.msk.msrb.mxu1 %vm253_vm0, %v1735_v7 }
  0x9b   : > { %v238_v49 = vpop.permute.xlu0 %237 }
  0x9c   : > { %v244_v51 = vsel %vm243_vm1, %v238_v49, %v240_v45 }
  0x9d   : > { %1416 = vmatpush.msk.msra.mxu0 %vm253_vm0, %v244_v51  ;;  %1519 = vmatpush.msk.msra.mxu3 %vm253_vm0, %v244_v51 }
  0x9e   : > { %1417 = vmatmul.msk.f32.vlgmr.msra.gmra.mxu0 %vm246_vm2, %v1414_v46  ;;  %1418 = vmatmul.msk.f32.vlgmr.msra.gmra.mxu3 %vm246_vm2, %v1415_v50  ;;  %v539_v57 = vpop.permute.xlu2 %538 }
  0x9f   : > { %1421 = vmatmul.msk.f32.gmra.mxu1 %vm246_vm2, %v1415_v50  ;;  %1425 = vmatpush.msk.msrb.mxu3 %vm253_vm0, %v1738_v8  ;;  %v1446_v8 = vld [vmem:[%s2010_s1 + $0x38] sm:$0xff] }
  0xa0   : > { %1424 = vmatmul.msk.f32.gmra.mxu2 %vm246_vm2, %v1415_v50  ;;  %1428 = vmatpush.msk.msrb.mxu0 %vm253_vm0, %v1740_v9 }
  0xa1   : > { %1439 = vmatpush.msk.msra.mxu3 %vm253_vm0, %v437_v52 }
  0xa2   : > { %1442 = vmatpush.msk.msra.mxu0 %vm253_vm0, %v434_v48 }
  0xa5   : > { %v430_v54 = vpop.permute.xlu1 %429 }
  0xa6   : > { %v436_v56 = vsel %vm435_vm3, %v430_v54, %v432_v43  ;;  %1426 = vmatmul.msk.f32.vlgmr.msrb.gmra.mxu3 %vm246_vm2, %v222_v53  ;;  %1429 = vmatmul.msk.f32.vlgmr.msrb.gmra.mxu0 %vm246_vm2, %v222_v53  ;;  %v650_v0 = vpop.permute.xlu2 %649 }
  0xa7   : > { %1436 = vmatpush.msk.msrb.mxu2 %vm253_vm0, %v436_v56  ;;  %1432 = vmatmul.msk.f32.vlgmr.msrb.gmra.mxu1 %vm246_vm2, %v222_v53 }
  0xa8   : > { %1437 = vmatmul.msk.f32.vlgmr.msrb.gmra.mxu2 %vm246_vm2, %v1434_v55 }
  0xad   : > { %v543_v59 = vpop.permute.xlu1 %542  ;;  %v541_v60 = vpop.permute.xlu0 %540 }
  0xae   : > { %v546_v62 = vsel %vm544_vm4, %v541_v60, %v543_v59  ;;  %v545_v63 = vsel %vm544_vm4, %v539_v57, %v541_v60  ;;  %1427 = vmatmul.msk.f32.gmra.mxu3 %vm246_vm2, %v223_v58  ;;  %1430 = vmatmul.msk.f32.gmra.mxu0 %vm246_vm2, %v223_v58  ;;  %v866_v6 = vpop.permute.xlu2 %865 }
  0xaf   : > { %1447 = vmatpush.msk.msra.mxu1 %vm253_vm0, %v545_v63  ;;  %1450 = vmatpush.msk.msra.mxu2 %vm253_vm0, %v546_v62 }
  0xb0   : > { %1433 = vmatmul.msk.f32.gmra.mxu1 %vm246_vm2, %v223_v58  ;;  %1438 = vmatmul.msk.f32.gmra.mxu2 %vm246_vm2, %v1435_v61 }
  0xb1   : > { %1453 = vmatpush.msk.msrb.mxu3 %vm253_vm0, %v543_v59 }
  0xb5   : > { %v648_v1 = vpop.permute.xlu1 %647  ;;  %v652_v3 = vpop.permute.xlu0 %651 }
  0xb6   : > { %1440 = vmatmul.msk.f32.vlgmr.msra.gmra.mxu3 %vm246_vm2, %v1434_v55  ;;  %1443 = vmatmul.msk.f32.vlgmr.msra.gmra.mxu0 %vm246_vm2, %v1434_v55  ;;  %v654_v4 = vsel %vm653_vm5, %v648_v1, %v650_v0  ;;  %v655_v5 = vsel %vm653_vm5, %v650_v0, %v652_v3  ;;  %v870_v11 = vpop.permute.xlu2 %869 }
  0xb7   : > { %1464 = vmatpush.msk.msrb.mxu2 %vm253_vm0, %v652_v3  ;;  %1458 = vmatpush.msk.msrb.mxu0 %vm253_vm0, %v654_v4 }
  0xb8   : > { %1448 = vmatmul.msk.f32.vlgmr.msra.gmra.mxu1 %vm246_vm2, %v1445_v2  ;;  %1451 = vmatmul.msk.f32.vlgmr.msra.gmra.mxu2 %vm246_vm2, %v1445_v2 }
  0xb9   : > { %1461 = vmatpush.msk.msrb.mxu1 %vm253_vm0, %v655_v5 }
  0xbd   : > { %v759_v7 = vpop.permute.xlu1 %758  ;;  %v757_v9 = vpop.permute.xlu0 %756 }
  0xbe   : > { %1441 = vmatmul.msk.f32.gmra.mxu3 %vm246_vm2, %v1435_v61  ;;  %1444 = vmatmul.msk.f32.gmra.mxu0 %vm246_vm2, %v1435_v61  ;;  %v763_v10 = vsel %vm762_vm6, %v757_v9, %v759_v7  ;;  %v975_v19 = vpop.permute.xlu2 %974 }
  0xbf   : > { %1469 = vmatpush.msk.msra.mxu3 %vm253_vm0, %v763_v10 }
  0xc0   : > { %1449 = vmatmul.msk.f32.gmra.mxu1 %vm246_vm2, %v1446_v8  ;;  %1452 = vmatmul.msk.f32.gmra.mxu2 %vm246_vm2, %v1446_v8 }
  0xc5   : > { %v761_v13 = vpop.permute.xlu1 %760  ;;  %v868_v14 = vpop.permute.xlu0 %867 }
  0xc6   : > { %v764_v15 = vsel %vm762_vm6, %v759_v7, %v761_v13  ;;  %1454 = vmatmul.msk.f32.vlgmr.msrb.gmra.mxu3 %vm246_vm2, %v1445_v2  ;;  %1459 = vmatmul.msk.f32.vlgmr.msrb.gmra.mxu0 %vm246_vm2, %v1456_v12  ;;  %v872_v16 = vsel %vm871_vm7, %v866_v6, %v868_v14  ;;  %v873_v17 = vsel %vm871_vm7, %v868_v14, %v870_v11  ;;  %v1086_v25 = vpop.permute.xlu2 %1085 }
  0xc7   : > { %1472 = vmatpush.msk.msra.mxu0 %vm253_vm0, %v764_v15  ;;  %1475 = vmatpush.msk.msra.mxu1 %vm253_vm0, %v761_v13 }
  0xc8   : > { %1462 = vmatmul.msk.f32.vlgmr.msrb.gmra.mxu1 %vm246_vm2, %v1456_v12  ;;  %1465 = vmatmul.msk.f32.vlgmr.msrb.gmra.mxu2 %vm246_vm2, %v1456_v12 }
  0xc9   : > { %1480 = vmatpush.msk.msra.mxu2 %vm253_vm0, %v872_v16  ;;  %1486 = vmatpush.msk.msrb.mxu0 %vm253_vm0, %v870_v11 }
  0xca   : > { %1483 = vmatpush.msk.msrb.mxu3 %vm253_vm0, %v873_v17 }
  0xcd   : > { %v979_v20 = vpop.permute.xlu1 %978  ;;  %v977_v21 = vpop.permute.xlu0 %976 }
  0xce   : > { %1455 = vmatmul.msk.f32.gmra.mxu3 %vm246_vm2, %v1446_v8  ;;  %1460 = vmatmul.msk.f32.gmra.mxu0 %vm246_vm2, %v1457_v18  ;;  %v982_v22 = vsel %vm980_vm8, %v977_v21, %v979_v20  ;;  %v981_v23 = vsel %vm980_vm8, %v975_v19, %v977_v21 }
  0xcf   : > { %1491 = vmatpush.msk.msrb.mxu1 %vm253_vm0, %v981_v23  ;;  %1494 = vmatpush.msk.msrb.mxu2 %vm253_vm0, %v982_v22 }
  0xd0   : > { %1463 = vmatmul.msk.f32.gmra.mxu1 %vm246_vm2, %v1457_v18  ;;  %1466 = vmatmul.msk.f32.gmra.mxu2 %vm246_vm2, %v1457_v18 }
  0xd5   : > { %v1088_v27 = vpop.permute.xlu0 %1087  ;;  %v1084_v28 = vpop.permute.xlu1 %1083 }
  0xd6   : > { %1470 = vmatmul.msk.f32.vlgmr.msra.gmra.mxu3 %vm246_vm2, %v1467_v24  ;;  %1473 = vmatmul.msk.f32.vlgmr.msra.gmra.mxu0 %vm246_vm2, %v1467_v24  ;;  %v1091_v29 = vsel %vm1089_vm9, %v1086_v25, %v1088_v27  ;;  %v1090_v30 = vsel %vm1089_vm9, %v1084_v28, %v1086_v25 }
  0xd7   : > { %1497 = vmatpush.msk.msra.mxu3 %vm253_vm0, %v979_v20  ;;  %1502 = vmatpush.msk.msra.mxu0 %vm253_vm0, %v1090_v30 }
  0xd8   : > { %1476 = vmatmul.msk.f32.vlgmr.msra.gmra.mxu1 %vm246_vm2, %v1467_v24  ;;  %1481 = vmatmul.msk.f32.vlgmr.msra.gmra.mxu2 %vm246_vm2, %v1478_v26 }
  0xd9   : > { %1508 = vmatpush.msk.msra.mxu2 %vm253_vm0, %v1088_v27  ;;  %1505 = vmatpush.msk.msra.mxu1 %vm253_vm0, %v1091_v29 }
  0xde   : > { %1471 = vmatmul.msk.f32.gmra.mxu3 %vm246_vm2, %v1468_v31  ;;  %1474 = vmatmul.msk.f32.gmra.mxu0 %vm246_vm2, %v1468_v31 }
  0xe0   : > { %1477 = vmatmul.msk.f32.gmra.mxu1 %vm246_vm2, %v1468_v31  ;;  %1482 = vmatmul.msk.f32.gmra.mxu2 %vm246_vm2, %v1479_v32 }
  0xe6   : > { %1484 = vmatmul.msk.f32.vlgmr.msrb.gmra.mxu3 %vm246_vm2, %v1478_v26  ;;  %1487 = vmatmul.msk.f32.vlgmr.msrb.gmra.mxu0 %vm246_vm2, %v1478_v26 }
  0xe8   : > { %1492 = vmatmul.msk.f32.vlgmr.msrb.gmra.mxu1 %vm246_vm2, %v1489_v36  ;;  %1495 = vmatmul.msk.f32.vlgmr.msrb.gmra.mxu2 %vm246_vm2, %v1489_v36 }
  0xee   : > { %1485 = vmatmul.msk.f32.gmra.mxu3 %vm246_vm2, %v1479_v32  ;;  %1488 = vmatmul.msk.f32.gmra.mxu0 %vm246_vm2, %v1479_v32 }
  0xf0   : > { %1493 = vmatmul.msk.f32.gmra.mxu1 %vm246_vm2, %v1490_v37  ;;  %1496 = vmatmul.msk.f32.gmra.mxu2 %vm246_vm2, %v1490_v37 }
  0xf6   : > { %1498 = vmatmul.msk.f32.vlgmr.msra.gmra.mxu3 %vm246_vm2, %v1489_v36  ;;  %1503 = vmatmul.msk.f32.vlgmr.msra.gmra.mxu0 %vm246_vm2, %v1500_v38 }
  0xf8   : > { %1506 = vmatmul.msk.f32.vlgmr.msra.gmra.mxu1 %vm246_vm2, %v1500_v38  ;;  %1509 = vmatmul.msk.f32.vlgmr.msra.gmra.mxu2 %vm246_vm2, %v1500_v38 }
  0xfe   : > { %1499 = vmatmul.msk.f32.gmra.mxu3 %vm246_vm2, %v1490_v37  ;;  %1504 = vmatmul.msk.f32.gmra.mxu0 %vm246_vm2, %v1501_v39 }
 0x100   : > { %1507 = vmatmul.msk.f32.gmra.mxu1 %vm246_vm2, %v1501_v39  ;;  %1510 = vmatmul.msk.f32.gmra.mxu2 %vm246_vm2, %v1501_v39 }
 0x114   : > { %v300_v40 = vpop.f32.mrf.mxu1 }
 0x118   : > { %v323_v41 = vpop.f32.mrf.mxu2 }
 0x11b   : > { %v277_v42 = vpop.f32.mrf.mxu0 }
 0x11c   : > { %v303_v43 = vpop.f32.mrf.mxu1 }
 0x121   : > { %v280_v44 = vpop.f32.mrf.mxu3 }
 0x123   : > { %v326_v45 = vpop.f32.mrf.mxu2  ;;  %v387_v46 = vpop.f32.mrf.mxu0 }
 0x124   : > { %v388_v47 = vadd.f32 %v387_v46, %v300_v40  ;;  %v410_v48 = vpop.f32.mrf.mxu1 }
 0x125   : > { %v411_v49 = vadd.f32 %v410_v48, %v323_v41 }
 0x129   : > { %v364_v50 = vpop.f32.mrf.mxu3 }
 0x12a   : > { %v365_v17 = vadd.f32 %v364_v50, %v277_v42 }
 0x12b   : > { %v390_v51 = vpop.f32.mrf.mxu0  ;;  %v467_v52 = vpop.f32.mrf.mxu2 }
 0x12c   : > { %v391_v53 = vadd.f32 %v390_v51, %v303_v43  ;;  %v519_v21 = vadd.f32 %v467_v52, %v365_v17 }
 0x12d   : > { %v413_v54 = vpop.f32.mrf.mxu1 }
 0x12e   : > { %v414_v55 = vadd.f32 %v413_v54, %v326_v45  ;;  %v1184_v45 = vpop.permute.xlu0 %1183 }
 0x131   : > { %v367_v56 = vpop.f32.mrf.mxu3 }
 0x132   : > { %v368_v24 = vadd.f32 %v367_v56, %v280_v44 }
 0x133   : > { %v470_v57 = vpop.f32.mrf.mxu2  ;;  %v513_v58 = vpop.f32.mrf.mxu0 }
 0x134   : > { %v522_v32 = vadd.f32 %v470_v57, %v368_v24  ;;  %v521_v34 = vadd.f32 %v513_v58, %v411_v49 }
 0x135   : > { %v576_v59 = vpop.f32.mrf.mxu1 }
 0x136   : > { %v628_v23 = vadd.f32 %v576_v59, %v519_v21 }
 0x139   : > { %v490_v60 = vpop.f32.mrf.mxu3 }
 0x13a   : > { %v520_v22 = vadd.f32 %v490_v60, %v388_v47 }
 0x13b   : > { %v516_v61 = vpop.f32.mrf.mxu0  ;;  %v599_v62 = vpop.f32.mrf.mxu2 }
 0x13c   : > { %v629_v26 = vadd.f32 %v599_v62, %v520_v22  ;;  %v524_v56 = vadd.f32 %v516_v61, %v414_v55 }
 0x13d   : > { %v579_v63 = vpop.f32.mrf.mxu1 }
 0x13e   : > { %v631_v37 = vadd.f32 %v579_v63, %v522_v32 }
 0x141   : > { %v493_v0 = vpop.f32.mrf.mxu3 }
 0x142   : > { %v523_v35 = vadd.f32 %v493_v0, %v391_v53 }
 0x143   : > { %v602_v1 = vpop.f32.mrf.mxu2  ;;  %v685_v2 = vpop.f32.mrf.mxu0 }
 0x144   : > { %v737_v27 = vadd.f32 %v685_v2, %v628_v23  ;;  %v632_v43 = vadd.f32 %v602_v1, %v523_v35 }
 0x145   : > { %v708_v3 = vpop.f32.mrf.mxu1 }
 0x146   : > { %v738_v30 = vadd.f32 %v708_v3, %v629_v26 }
 0x149   : > { %v622_v4 = vpop.f32.mrf.mxu3 }
 0x14a   : > { %v630_v38 = vadd.f32 %v622_v4, %v521_v34 }
 0x14b   : > { %v688_v5 = vpop.f32.mrf.mxu0  ;;  %v731_v6 = vpop.f32.mrf.mxu2 }
 0x14c   : > { %v740_v41 = vadd.f32 %v688_v5, %v631_v37  ;;  %v739_v51 = vadd.f32 %v731_v6, %v630_v38  ;;  %v1189_v6 = vpop.permute.xlu1 %1188 }
 0x14d   : > { %v711_v7 = vpop.f32.mrf.mxu1 }
 0x14e   : > { %v741_v50 = vadd.f32 %v711_v7, %v632_v43 }
 0x151   : > { %v625_v8 = vpop.f32.mrf.mxu3 }
 0x152   : > { %v633_v60 = vadd.f32 %v625_v8, %v524_v56  ;;  %v1512_v56 = vld [vmem:[%s2012_s3 + $0x38] sm:$0xff] }
 0x153   : > { %v1908_v9 = vpop.f32.mrf.mxu2  ;;  %v817_v10 = vpop.f32.mrf.mxu0 }
 0x154   : > { %v847_v36 = vadd.f32 %v817_v10, %v738_v30  ;;  %v742_v61 = vadd.f32 %v1908_v9, %v633_v60 }
 0x155   : > { %v840_v11 = vpop.f32.mrf.mxu1 }
 0x156   : > { %v848_v53 = vadd.f32 %v840_v11, %v739_v51 }
 0x159   : > { %v794_v12 = vpop.f32.mrf.mxu3 }
 0x15a   : > { %v846_v31 = vadd.f32 %v794_v12, %v737_v27 }
 0x15b   : > { %v820_v13 = vpop.f32.mrf.mxu0  ;;  %v903_v14 = vpop.f32.mrf.mxu2 }
 0x15c   : > { %v955_v39 = vadd.f32 %v903_v14, %v846_v31  ;;  %v850_v57 = vadd.f32 %v820_v13, %v741_v50  ;;  %v1271_v50 = vld [vmem:[%s2012_s3] sm:$0xff] }
 0x15d   : > { %v1910_v15 = vpop.f32.mrf.mxu1 }
 0x15e   : > { %v851_v14 = vadd.f32 %v1910_v15, %v742_v61 }
 0x161   : > { %v797_v16 = vpop.f32.mrf.mxu3 }
 0x162   : > { %v849_v46 = vadd.f32 %v797_v16, %v740_v41 }
 0x163   : > { %v906_v18 = vpop.f32.mrf.mxu2  ;;  %v949_v19 = vpop.f32.mrf.mxu0 }
 0x164   : > { %v958_v62 = vadd.f32 %v906_v18, %v849_v46  ;;  %v957_v63 = vadd.f32 %v949_v19, %v848_v53  ;;  %v1273_v46 = vld [vmem:[%s2012_s3 + $0x10] sm:$0xff] }
 0x165   : > { %v1012_v20 = vpop.f32.mrf.mxu1 }
 0x166   : > { %v1064_v44 = vadd.f32 %v1012_v20, %v955_v39 }
 0x169   : > { %v926_v25 = vpop.f32.mrf.mxu3 }
 0x16a   : > { %v956_v40 = vadd.f32 %v926_v25, %v847_v36 }
 0x16b   : > { %v952_v28 = vpop.f32.mrf.mxu0  ;;  %v1035_v29 = vpop.f32.mrf.mxu2 }
 0x16c   : > { %v1065_v52 = vadd.f32 %v1035_v29, %v956_v40  ;;  %v960_v19 = vadd.f32 %v952_v28, %v851_v14  ;;  %v1275_v14 = vld [vmem:[%s2012_s3 + $0x20] sm:$0xff] }
 0x16d   : > { %v1015_v33 = vpop.f32.mrf.mxu1 }
 0x16e   : > { %v1067_v4 = vadd.f32 %v1015_v33, %v958_v62 }
 0x171   : > { %v929_v42 = vpop.f32.mrf.mxu3 }
 0x172   : > { %v959_v0 = vadd.f32 %v929_v42, %v850_v57 }
 0x173   : > { %v1038_v47 = vpop.f32.mrf.mxu2  ;;  %v1121_v48 = vpop.f32.mrf.mxu0 }
 0x174   : > { %v1173_v54 = vadd.f32 %v1121_v48, %v1064_v44  ;;  %v1068_v11 = vadd.f32 %v1038_v47, %v959_v0  ;;  %v1513_v47 = vld [vmem:[%s2012_s3 + $0x40] sm:$0xff] }
 0x175   : > { %v1144_v49 = vpop.f32.mrf.mxu1 }
 0x176   : > { %v1174_v58 = vadd.f32 %v1144_v49, %v1065_v52  ;;  %v1191_v59 = vadd.f32 %v1184_v45, %v1173_v54  ;;  %v1272_v52 = vld [vmem:[%s2012_s3 + $0x8] sm:$0xff]  ;;  %v1511_v54 = vld [vmem:[%s2012_s3 + $0x30] sm:$0xff] }
 0x178   : > { %v1192_v1 = vadd.f32 %v1184_v45, %v1174_v58  ;;  %v1197_v2 = vmax.f32 %v1191_v59, 0.0 }
 0x179   : > { %v1058_v3 = vpop.f32.mrf.mxu3 }
 0x17a   : > { %v1066_v5 = vadd.f32 %v1058_v3, %v957_v63  ;;  %v1198_v10 = vmax.f32 %v1192_v1, 0.0  ;;  %1209 = vrot.lane.b32.xlu2 %v1197_v2, %s1635_s10 }
 0x17b   : > { %v1124_v7 = vpop.f32.mrf.mxu0  ;;  %v1167_v55 = vpop.f32.mrf.mxu2 }
 0x17c   : > { %1211 = vrot.lane.b32.xlu1 %v1198_v10, %s1635_s10  ;;  %v1176_v8 = vadd.f32 %v1124_v7, %v1067_v4  ;;  %v1175_v12 = vadd.f32 %v1167_v55, %v1066_v5  ;;  %v1276_v7 = vld [vmem:[%s2012_s3 + $0x28] sm:$0xff]  ;;  %v1516_v55 = vld [vmem:[%s2012_s3 + $0x58] sm:$0xff] }
 0x17d   : > { %v1147_v13 = vpop.f32.mrf.mxu1 }
 0x17e   : > { %v1177_v16 = vadd.f32 %v1147_v13, %v1068_v11  ;;  %v1193_v17 = vadd.f32 %v1184_v45, %v1175_v12  ;;  %v1194_v18 = vadd.f32 %v1189_v6, %v1176_v8  ;;  %v1274_v11 = vld [vmem:[%s2012_s3 + $0x18] sm:$0xff] }
 0x180   : > { %v1199_v20 = vmax.f32 %v1193_v17, 0.0  ;;  %v1195_v21 = vadd.f32 %v1189_v6, %v1177_v16  ;;  %v1200_v22 = vmax.f32 %v1194_v18, 0.0  ;;  %v1514_v16 = vld [vmem:[%s2012_s3 + $0x48] sm:$0xff]  ;;  %v1515_v17 = vld [vmem:[%s2012_s3 + $0x50] sm:$0xff] }
 0x181   : > { %v1061_v23 = vpop.f32.mrf.mxu3 }
 0x182   : > { %v1069_v24 = vadd.f32 %v1061_v23, %v960_v19  ;;  %v1201_v25 = vmax.f32 %v1195_v21, 0.0  ;;  %1215 = vrot.lane.b32.xlu0 %v1200_v22, %s1635_s10  ;;  %1213 = vrot.lane.b32.xlu2 %v1199_v20, %s1635_s10 }
 0x183   : > { %v1170_v9 = vpop.f32.mrf.mxu2 }
 0x184   : > { %1217 = vrot.lane.b32.xlu1 %v1201_v25, %s1635_s10  ;;  %v1178_v26 = vadd.f32 %v1170_v9, %v1069_v24 }
 0x186   : > { %v1196_v27 = vadd.f32 %v1189_v6, %v1178_v26 }
 0x188   : > { %v1202_v15 = vmax.f32 %v1196_v27, 0.0 }
 0x18a   : > { %1219 = vrot.lane.b32.xlu2 %v1202_v15, %s1635_s10  ;;  %s1354_s10 = sshll.u32 %s1350_s9, 4  ;;  %s1355_s10 = int_to_ptr.hbm [resolvable:$true] %s1354_s10 }
 0x18b   : > { %s1585_s17 = sshra.s32 %s1355_s10, 4  ;;  %s1586_s17 = int_to_ptr.hbm [resolvable:$true] %s1585_s17 }
 0x18c   : > { %s1587_s22 = scalar_lea.hbm %s1586_s17, 1  ;;  %p1592_p0 = scmp.lt.s32.totalorder %s1586_s17, %s2014_s5 }
 0x18d   : > { %p1588_p11 = scmp.ne.s32.totalorder %s1586_s17, %s1587_s22  ;;  %p1593_p1 = scmp.lt.s32.totalorder %s1591_s26, %s1587_s22 }
 0x18f   : > { %p1589_p12 = pnand %p1588_p11, %p1712_p5  ;;  %p1594_p2 = por %p1593_p1, %p1592_p0 }
 0x191   : > { %p1590_p13 = pneg %p1589_p12 }
 0x193   : > { %p1595_p3 = pnand %p1594_p2, %p1590_p13 }
 0x1d4   : > { %v1210_v29 = vpop.permute.xlu2 %1209 }
 0x1dc   : > { %v1214_v28 = vpop.permute.xlu2 %1213 }
 0x1dd   : > { %v1233_v30 = vmax.f32 %v1199_v20, %v1214_v28 }
 0x1df   : > { %1247 = vrot.lane.b32.xlu2 %v1233_v30, %s1637_s12 }
 0x1e4   : > { %v1220_v31 = vpop.permute.xlu2 %1219 }
 0x1e5   : > { %v1236_v32 = vmax.f32 %v1202_v15, %v1220_v31 }
 0x1e7   : > { %1253 = vrot.lane.b32.xlu2 %v1236_v32, %s1637_s12 }
 0x1ee   : > { %v1212_v33 = vpop.permute.xlu1 %1211 }
 0x1ef   : > { %v1221_v34 = vsel %vm243_vm1, %v1210_v29, %v1212_v33  ;;  %v1222_v35 = vsel %vm243_vm1, %v1212_v33, %v1214_v28 }
 0x1f0   : > { %v1231_v36 = vmax.f32 %v1197_v2, %v1221_v34  ;;  %v1232_v37 = vmax.f32 %v1198_v10, %v1222_v35 }
 0x1f2   : > { %1243 = vrot.lane.b32.xlu0 %v1231_v36, %s1637_s12  ;;  %1245 = vrot.lane.b32.xlu1 %v1232_v37, %s1637_s12 }
 0x1f4   : > { %v1216_v38 = vpop.permute.xlu0 %1215 }
 0x1f6   : > { %v1218_v39 = vpop.permute.xlu1 %1217 }
 0x1f7   : > { %v1224_v40 = vsel %vm243_vm1, %v1218_v39, %v1220_v31  ;;  %v1223_v41 = vsel %vm243_vm1, %v1216_v38, %v1218_v39 }
 0x1f8   : > { %v1235_v42 = vmax.f32 %v1201_v25, %v1224_v40  ;;  %v1234_v43 = vmax.f32 %v1200_v22, %v1223_v41  ;;  %v1331_v40 = vlaneseq }
 0x1fa   : > { %1249 = vrot.lane.b32.xlu0 %v1234_v43, %s1637_s12  ;;  %1251 = vrot.lane.b32.xlu1 %v1235_v42, %s1637_s12  ;;  %s215_s12 = sand.u32 1, %s1625_s19  }
 0x1fb   : > { %s216_s14 = scalar_lea.vmem [#allocation2], %s215_s12  ;;  %s1342_s16 = scalar_lea.sflag [#allocation3], %s215_s12 }
 0x1fc   : > { %s1352_s15 = sshll.u32 %s216_s14, 4  ;;  %s1353_s15 = int_to_ptr.vmem [resolvable:$true] %s1352_s15 }
 0x239   : > { %v1248_v44 = vpop.permute.xlu2 %1247 }
 0x23a   : > { %v1267_v45 = vmax.f32 %v1233_v30, %v1248_v44 }
 0x23c   : > { %v1279_v59 = vmul.f32 %v1273_v46, %v1267_v45  ;;  %v1310_v60 = vmul.f32 %v1513_v47, %v1267_v45  ;;  %v1332_v45 = vand.u32 127, %v1331_v40 }
 0x23e   : > { %v1315_v10 = vsel %vm1284_vm10, %v1310_v60, 0.0  ;;  %v1285_v6 = vsel %vm1284_vm10, %v1279_v59, 0.0  ;;  %vm1333_vm11 = vcmp.eq.s32.totalorder %v1332_v45, 0  ;;  %vm1335_vm12 = vcmp.eq.s32.totalorder %v1332_v45, 1 }
 0x241   : > { %v1254_v62 = vpop.permute.xlu2 %1253 }
 0x242   : > { %v1270_v5 = vmax.f32 %v1236_v32, %v1254_v62 }
 0x244   : > { %v1282_v22 = vmul.f32 %v1276_v7, %v1270_v5  ;;  %v1313_v23 = vmul.f32 %v1516_v55, %v1270_v5 }
 0x246   : > { %v1320_v29 = vsel %vm1284_vm10, %v1313_v23, 0.0  ;;  %v1290_v28 = vsel %vm1284_vm10, %v1282_v22, 0.0 }
 0x264   : > { %v1244_v48 = vpop.permute.xlu0 %1243  ;;  %v1246_v51 = vpop.permute.xlu1 %1245 }
 0x265   : > { %v1255_v49 = vsel %vm544_vm4, %v1244_v48, %v1246_v51  ;;  %v1256_v53 = vsel %vm544_vm4, %v1246_v51, %v1248_v44 }
 0x266   : > { %v1265_v57 = vmax.f32 %v1231_v36, %v1255_v49  ;;  %v1266_v58 = vmax.f32 %v1232_v37, %v1256_v53  ;;  %v1338_v49 = vld [vmem:[%s2013_s4] sm:$0x1] }
 0x268   : > { %v1277_v63 = vmul.f32 %v1271_v50, %v1265_v57  ;;  %v1278_v0 = vmul.f32 %v1272_v52, %v1266_v58  ;;  %v1308_v1 = vmul.f32 %v1511_v54, %v1265_v57  ;;  %v1309_v2 = vmul.f32 %v1512_v56, %v1266_v58 }
 0x26a   : > { %v1314_v3 = vadd.f32 %v1309_v2, %v1308_v1  ;;  %v1283_v4 = vadd.f32 %v1278_v0, %v1277_v63 }
 0x26c   : > { %v1250_v61 = vpop.permute.xlu0 %1249  ;;  %v1252_v8 = vpop.permute.xlu1 %1251  ;;  %v1316_v12 = vadd.f32 %v1315_v10, %v1314_v3  ;;  %v1286_v13 = vadd.f32 %v1285_v6, %v1283_v4 }
 0x26d   : > { %v1257_v18 = vsel %vm544_vm4, %v1250_v61, %v1252_v8  ;;  %v1258_v19 = vsel %vm544_vm4, %v1252_v8, %v1254_v62 }
 0x26e   : > { %v1268_v20 = vmax.f32 %v1234_v43, %v1257_v18  ;;  %v1269_v21 = vmax.f32 %v1235_v42, %v1258_v19  ;;  %1317 = vadd.xlane.f32.xlu2 %v1316_v12  ;;  %1287 = vadd.xlane.f32.xlu0 %v1286_v13 }
 0x270   : > { %v1280_v24 = vmul.f32 %v1274_v11, %v1268_v20  ;;  %v1281_v25 = vmul.f32 %v1275_v14, %v1269_v21  ;;  %v1311_v9 = vmul.f32 %v1514_v16, %v1268_v20  ;;  %v1312_v26 = vmul.f32 %v1515_v17, %v1269_v21 }
 0x272   : > { %v1319_v27 = vadd.f32 %v1312_v26, %v1311_v9  ;;  %v1289_v15 = vadd.f32 %v1281_v25, %v1280_v24 }
 0x274   : > { %v1321_v30 = vadd.f32 %v1320_v29, %v1319_v27  ;;  %v1291_v31 = vadd.f32 %v1290_v28, %v1289_v15 }
 0x276   : > { %1322 = vadd.xlane.f32.xlu2 %v1321_v30  ;;  %1292 = vadd.xlane.f32.xlu1 %v1291_v31 }
 0x2e1   : > { %v1318_v32 = vpop.xlane.xlu2 %1317  ;;  %v1288_v33 = vpop.xlane.xlu0 %1287 }
 0x2e9   : > { %v1293_v34 = vpop.xlane.xlu1 %1292  ;;  %v1323_v35 = vpop.xlane.xlu2 %1322 }
 0x2ea   : > { %v1294_v36 = vadd.f32 %v1293_v34, %v1288_v33  ;;  %v1324_v37 = vadd.f32 %v1323_v35, %v1318_v32 }
 0x2ec   : > { %v1295_v38 = vrot.slane %v1294_v36, 4  ;;  %v1325_v39 = vrot.slane %v1324_v37, 4 }
 0x2ee   : > { %v1296_v41 = vadd.f32 %v1295_v38, %v1294_v36  ;;  %v1326_v42 = vadd.f32 %v1325_v39, %v1324_v37 }
 0x2f0   : > { %v1297_v43 = vrot.slane %v1296_v41, 2  ;;  %v1327_v44 = vrot.slane %v1326_v42, 2 }
 0x2f2   : > { %v1298_v46 = vadd.f32 %v1297_v43, %v1296_v41  ;;  %v1328_v47 = vadd.f32 %v1327_v44, %v1326_v42 }
 0x2f4   : > { %v1299_v48 = vrot.slane %v1298_v46, 1  ;;  %v1329_v50 = vrot.slane %v1328_v47, 1 }
 0x2f6   : > { %v1300_v51 = vadd.f32 %v1299_v48, %v1298_v46  ;;  %v1330_v52 = vadd.f32 %v1329_v50, %v1328_v47 }
 0x2f8   : > { %v1334_v54 = vsel %vm1333_vm11, %v1300_v51, 0.0  ;;  %v1336_v56 = vsel %vm1335_vm12, %v1330_v52, 0.0 }
 0x2f9   : > { %v1337_v53 = vadd.f32 %v1336_v56, %v1334_v54 }
 0x2fb   : > { %v1339_v57 = vadd.f32 %v1338_v49, %v1337_v53 }
 0x2fd   : > { %1340 = vst [vmem:[%s216_s14] sm:$0x1] %v1339_v57 }
 0x2fe   : > { %1598 = shalt.err (!%p1595_p3)
}
 0x2ff   : > { %1521 = dma.vmem_to_hbm [thread:$0]  (%p1712_p5), %s1353_s15, 16, %s1355_s10, %s1342_s16  }
 0x300 PF: > { %p1527_p4 = scmp.ge.s32.totalorder %s1633_s21, 2  ;;  %s1366_s12 = sand.u32 1, %s1621_s18  }
 0x301   : > { %s1367_s7 = scalar_lea.sflag [#allocation3], %s1366_s12 }
 0x302   : > { %p1524_p7 = pnand %p1527_p4, %p1716_p6 }
 0x304   : > { %p1525_p8 = pneg %p1524_p7 }
 0x306   : > { %1616 = dma.done.wait (%p1525_p8), %s1367_s7, 16  }
 0x307   : > { %1618 = vsyncadd (%p1525_p8), %s1367_s7, 4294967280  ;;  %p15_p9 = scmp.ge.s32.totalorder %s1699_s24, 4   ;;  %s2017_s18 = smov %s1625_s19 }
 0x308   : > { %s2018_s19 = smov %s1629_s20  ;;  %s2019_s20 = smov %s1710_s27 }
 0x309   : > { %s2020_s21 = smov %s1699_s24  ;;  %17 = sbr.rel (!%p15_p9) target bundleno = 3 (0x3), region = 93 }
 0x30e   :  { %1372 = vsyncpa [#allocation3], 1 }
 0x30f   :  { %1374 = vsyncpa [#allocation3 + $0x1], 1 }

</bundles_post_ra>
